<compile_context>
chip_gen: v5e
topology: v5e:2x2
jax: 0.10.0
libtpu: 0.0.40
codegen_flags: <defaults>
</compile_context>

<pallas_src>
import functools

import jax
import jax.numpy as jnp
from jax import lax
from jax.experimental import pallas as pl
from jax.experimental.pallas import tpu as pltpu


def _round_up(n: int, m: int) -> int:
    return ((n + m - 1) // m) * m


@functools.lru_cache(maxsize=None)
def _vmem_budget() -> int:
    """Scoped-VMEM budget: ~3/4 of physical VMEM (leave compiler headroom),
    never above 100 MiB.  Falls back to the v7x-safe 64 MiB assumption."""
    phys = 64 << 20
    try:
        phys = int(getattr(pltpu.get_tpu_info(), "vmem_capacity_bytes", phys))
    except Exception:
        pass
    return int(min(phys * 3 // 4, 100 << 20))


def _vmem_limit(nbytes: int, budget: int) -> int:
    return int(min(max(nbytes + (8 << 20), 16 << 20), budget))


# ---------------------------------------------------------------------------
# Pass 1 (hw_splits == 1): att_sm[b] = softmax(rowmax(x xT) - x xT),
# Gram accumulated over HW chunks, softmax in the epilogue of the last chunk.
# ---------------------------------------------------------------------------
def _gram_softmax_kernel(x_ref, att_ref, acc_ref):
    # x_ref:   (1, C, blk) compute-dtype chunk
    # att_ref: (1, C, C)   compute-dtype output (resident across the HW axis)
    # acc_ref: (C, C) f32  Gram accumulator scratch
    k = pl.program_id(1)

    @pl.when(k == 0)
    def _():
        acc_ref[...] = jnp.zeros_like(acc_ref)

    xc = x_ref[0]                                        # (C, blk)
    # NT matmul (contract the lane dim of both operands): no transpose,
    # bf16 MXU operands, f32 accumulation.
    acc_ref[...] += lax.dot_general(
        xc, xc, dimension_numbers=(((1,), (1,)), ((), ())),
        preferred_element_type=jnp.float32)

    @pl.when(k == pl.num_programs(1) - 1)
    def _():
        att = acc_ref[...]                               # (C, C) f32
        # softmax(rowmax(A) - A) == softmax(c - A) for any per-row shift c;
        # using the row min keeps all logits <= 0 with a single XLU reduce.
        e = jnp.exp(jnp.min(att, axis=-1, keepdims=True) - att)
        s = jnp.sum(e, axis=-1, keepdims=True)
        att_ref[0] = (e * pl.reciprocal(s, approx=True)).astype(att_ref.dtype)


# ---------------------------------------------------------------------------
# Pass 1a/1b (hw_splits > 1): partial Grams over a second "parallel" axis
# (keeps both v7x TensorCores busy at B == 1), then a tiny combine+softmax.
# ---------------------------------------------------------------------------
def _gram_partial_kernel(x_ref, gram_ref):
    # gram_ref: (1, 1, C, C) f32 output block; its block index is constant
    # over the reduction axis so it stays VMEM-resident and doubles as the
    # accumulator (no extra scratch buffer).
    k = pl.program_id(2)

    @pl.when(k == 0)
    def _():
        gram_ref[...] = jnp.zeros_like(gram_ref)

    xc = x_ref[0]                                        # (C, blk)
    gram_ref[0, 0] += lax.dot_general(
        xc, xc, dimension_numbers=(((1,), (1,)), ((), ())),
        preferred_element_type=jnp.float32)


def _combine_softmax_kernel(gram_ref, att_ref):
    # gram_ref: (1, hw_splits, C, C) f32 partial Grams; att_ref: (1, C, C)
    att = jnp.sum(gram_ref[0], axis=0)                   # (C, C) f32
    e = jnp.exp(jnp.min(att, axis=-1, keepdims=True) - att)
    s = jnp.sum(e, axis=-1, keepdims=True)
    att_ref[0] = (e * pl.reciprocal(s, approx=True)).astype(att_ref.dtype)


# ---------------------------------------------------------------------------
# Pass 2: out[b, :, chunk] = beta * att_sm[b] @ x[b, :, chunk] + x[b, :, chunk]
# ---------------------------------------------------------------------------
def _apply_attention_kernel(beta_ref, att_ref, x_ref, o_ref):
    # beta_ref: SMEM (1,) f32;  att_ref: (1, C, C) compute dtype;
    # x_ref: (1, C, blk) compute dtype;  o_ref: (1, C, blk) x.dtype
    beta = beta_ref[0]
    feat = jnp.dot(att_ref[0], x_ref[0],                 # bf16 x bf16 -> f32
                   preferred_element_type=jnp.float32)
    o_ref[0] = (beta * feat + x_ref[0].astype(jnp.float32)).astype(o_ref.dtype)


def channel_attention_module(x, beta, *, compute_dtype=jnp.bfloat16,
                             hw_block=8192, hw_splits=1):
    """x: (B, C, H, W), beta: (1,).  Returns beta * attn(x)·x + x.

    compute_dtype: MXU / streaming dtype (bf16 default; jnp.float32 = exact).
    hw_block:      upper bound on the lane-dense HW chunk size.
    hw_splits:     >1 splits the pass-1 Gram reduction into independent
                   partial sums over a second "parallel" grid axis — use 2 on
                   TPU v7x when B is small so both TensorCores stay busy.
    """
    B, C, H, W = x.shape
    HW = H * W

    in_bytes = jnp.dtype(compute_dtype).itemsize         # streamed x / att
    out_bytes = jnp.dtype(x.dtype).itemsize              # pass-2 output
    att_bytes = in_bytes

    budget = _vmem_budget()
    avail = budget - (4 << 20)                            # compiler headroom

    # Largest lane-dense HW chunk whose double-buffered working set fits the
    # budget for BOTH passes (pass 2 usually dominates: bf16 in + f32 out).
    fixed1 = C * C * 4 + 2 * C * C * att_bytes            # acc scratch + db att
    per1 = 2 * C * in_bytes
    fixed2 = 2 * C * C * att_bytes                        # db att in
    per2 = 2 * C * (in_bytes + out_bytes)
    blk_limit = min((avail - fixed1) // per1, (avail - fixed2) // per2)
    blk = min(hw_block, max(blk_limit, 128), _round_up(HW, 128))
    blk = max(128, (blk // 128) * 128)

    HW_pad = _round_up(HW, blk * hw_splits)
    num_hw = HW_pad // blk
    ks = num_hw // hw_splits                              # HW chunks per split

    x_flat = x.reshape(B, C, HW)
    if HW_pad != HW:
        # Zero lanes contribute nothing to x·xT and are cropped at the end.
        x_flat = jnp.pad(x_flat, ((0, 0), (0, 0), (0, HW_pad - HW)))
    # Single wrapper-side cast: both passes DMA compute_dtype (bf16) blocks.
    x_stream = x_flat.astype(compute_dtype)

    # -------------------- pass 1: softmaxed channel attention ---------------
    if hw_splits == 1:
        att_sm = pl.pallas_call(
            _gram_softmax_kernel,
            out_shape=jax.ShapeDtypeStruct((B, C, C), compute_dtype),
            grid=(B, num_hw),
            in_specs=[pl.BlockSpec((1, C, blk), lambda b, k: (b, 0, k))],
            out_specs=pl.BlockSpec((1, C, C), lambda b, k: (b, 0, 0)),
            scratch_shapes=[pltpu.VMEM((C, C), jnp.float32)],
            compiler_params=pltpu.CompilerParams(
                dimension_semantics=("parallel", "arbitrary"),
                vmem_limit_bytes=_vmem_limit(fixed1 + per1 * blk, budget)),
            cost_estimate=pl.CostEstimate(
                flops=2 * B * C * C * HW_pad,
                transcendentals=B * C * C,
                bytes_accessed=B * C * HW_pad * in_bytes
                + B * C * C * att_bytes),
        )(x_stream)
    else:
        gram = pl.pallas_call(
            _gram_partial_kernel,
            out_shape=jax.ShapeDtypeStruct((B, hw_splits, C, C), jnp.float32),
            grid=(B, hw_splits, ks),
            in_specs=[pl.BlockSpec((1, C, blk),
                                   lambda b, s, k: (b, 0, s * ks + k))],
            out_specs=pl.BlockSpec((1, 1, C, C),
                                   lambda b, s, k: (b, s, 0, 0)),
            compiler_params=pltpu.CompilerParams(
                dimension_semantics=("parallel", "parallel", "arbitrary"),
                vmem_limit_bytes=_vmem_limit(2 * C * C * 4 + per1 * blk,
                                             budget)),
            cost_estimate=pl.CostEstimate(
                flops=2 * B * C * C * HW_pad,
                transcendentals=0,
                bytes_accessed=B * C * HW_pad * in_bytes
                + B * hw_splits * C * C * 4),
        )(x_stream)
        att_sm = pl.pallas_call(
            _combine_softmax_kernel,
            out_shape=jax.ShapeDtypeStruct((B, C, C), compute_dtype),
            grid=(B,),
            in_specs=[pl.BlockSpec((1, hw_splits, C, C),
                                   lambda b: (b, 0, 0, 0))],
            out_specs=pl.BlockSpec((1, C, C), lambda b: (b, 0, 0)),
            compiler_params=pltpu.CompilerParams(
                dimension_semantics=("parallel",),
                vmem_limit_bytes=_vmem_limit(
                    2 * hw_splits * C * C * 4 + 2 * C * C * att_bytes
                    + C * C * 4, budget)),
            cost_estimate=pl.CostEstimate(
                flops=B * (hw_splits + 3) * C * C,
                transcendentals=B * C * C,
                bytes_accessed=B * hw_splits * C * C * 4
                + B * C * C * att_bytes),
        )(gram)

    # -------------------- pass 2: apply attention + residual ----------------
    out_flat = pl.pallas_call(
        _apply_attention_kernel,
        out_shape=jax.ShapeDtypeStruct((B, C, HW_pad), x.dtype),
        grid=(B, num_hw),
        in_specs=[
            pl.BlockSpec(memory_space=pltpu.MemorySpace.SMEM),   # beta scalar
            pl.BlockSpec((1, C, C), lambda b, k: (b, 0, 0)),     # att_sm
            pl.BlockSpec((1, C, blk), lambda b, k: (b, 0, k)),   # x chunk
        ],
        out_specs=pl.BlockSpec((1, C, blk), lambda b, k: (b, 0, k)),
        compiler_params=pltpu.CompilerParams(
            dimension_semantics=("parallel", "parallel"),
            vmem_limit_bytes=_vmem_limit(fixed2 + per2 * blk, budget)),
        cost_estimate=pl.CostEstimate(
            flops=2 * B * C * C * HW_pad + 3 * B * C * HW_pad,
            transcendentals=0,
            bytes_accessed=B * num_hw * C * C * att_bytes
            + B * C * HW_pad * (in_bytes + out_bytes)),
    )(beta, att_sm, x_stream)

    return out_flat[:, :, :HW].reshape(B, C, H, W)


def channel_attention_reference(x, beta, compute_dtype=None):
    """Pure-JAX reference.  compute_dtype=None mirrors the exact f32 PyTorch
    forward; passing e.g. jnp.bfloat16 emulates the kernel's streaming/MXU
    dtype (bf16 operands and bf16 residual input, f32 accumulation)."""
    B, C, H, W = x.shape
    a = x.reshape(B, C, H * W)
    if compute_dtype is not None:
        a = a.astype(compute_dtype)
    att = jnp.einsum("bcn,bdn->bcd", a, a, preferred_element_type=jnp.float32)
    att = jax.nn.softmax(jnp.max(att, axis=-1, keepdims=True) - att, axis=-1)
    if compute_dtype is not None:
        att = att.astype(compute_dtype)
    feat = jnp.einsum("bcd,bdn->bcn", att, a,
                      preferred_element_type=jnp.float32)
    out = beta[0] * feat + a.astype(jnp.float32)
    return out.reshape(B, C, H, W).astype(x.dtype)


if __name__ == "__main__":
    key = jax.random.PRNGKey(0)
    B, C, H, W = 2, 4, 16, 16
    x = jax.random.normal(key, (B, C, H, W), dtype=jnp.float32)

    beta0 = jnp.zeros((1,), dtype=jnp.float32)      # module init: zeros(1)
    beta_nz = jnp.array([0.5], dtype=jnp.float32)

    # Exact (f32-MXU) path: beta=0 must reproduce the input exactly.
    out0 = jax.block_until_ready(
        channel_attention_module(x, beta0, compute_dtype=jnp.float32))
    assert out0.shape == (B, C, H, W)
    assert jnp.allclose(out0, x, atol=1e-6), "beta=0 (f32) path mismatch"

    ref_f32 = channel_attention_reference(x, beta_nz)
    ref_bf16 = channel_attention_reference(x, beta_nz,
                                           compute_dtype=jnp.bfloat16)

    # Exact f32 path vs exact reference.
    out_f32 = jax.block_until_ready(
        channel_attention_module(x, beta_nz, compute_dtype=jnp.float32))
    assert jnp.allclose(out_f32, ref_f32, atol=5e-3, rtol=5e-3), \
        "f32 path mismatch vs reference"

    # Default bf16-streaming path vs bf16-emulating reference (+ loose f32).
    out_bf16 = jax.block_until_ready(channel_attention_module(x, beta_nz))
    assert jnp.allclose(out_bf16, ref_bf16, atol=1e-2, rtol=1e-2), \
        "bf16 path mismatch vs bf16 reference"
    assert jnp.allclose(out_bf16, ref_f32, atol=2.5e-1, rtol=1e-1), \
        "bf16 path grossly off vs f32 reference"

    # Multi-chunk Gram accumulation (hw_block smaller than HW).
    out_chunked = jax.block_until_ready(
        channel_attention_module(x, beta_nz, hw_block=128))
    assert jnp.allclose(out_chunked, ref_bf16, atol=1e-2, rtol=1e-2), \
        "chunked bf16 path mismatch"

    # hw_splits=2 path (v7x megacore layout for small B): correctness check.
    x1 = x[:1]
    out_split = jax.block_until_ready(
        channel_attention_module(x1, beta_nz, hw_block=128, hw_splits=2))
    ref_split = channel_attention_reference(x1, beta_nz,
                                            compute_dtype=jnp.bfloat16)
    assert jnp.allclose(out_split, ref_split, atol=1e-2, rtol=1e-2), \
        "hw_splits=2 path mismatch"

    print("KERNEL_OK")
</pallas_src>

<mosaic_0001>
module attributes {stable_mosaic.version = 11 : i64} {
  func.func @_gram_softmax_kernel(%arg0: i32, %arg1: i32, %arg2: memref<1x4x256xf32, #tpu.memory_space<vmem>>, %arg3: memref<1x4x4xf32, #tpu.memory_space<vmem>>, %arg4: memref<4x4xf32, #tpu.memory_space<vmem>>) attributes {dimension_semantics = [#tpu.dimension_semantics<parallel>, #tpu.dimension_semantics<arbitrary>], iteration_bounds = array<i64: 2, 1>, scalar_prefetch = 0 : i64, scratch_operands = 1 : i64, tpu.core_type = #tpu.core_type<tc>, window_params = [{transform_indices = @transform_0, window_bounds = array<i64: 1, 4, 256>}, {transform_indices = @transform_1, window_bounds = array<i64: 1, 4, 4>}]} {
    %c0_i32 = arith.constant 0 : i32
    %0 = arith.cmpi eq, %arg1, %c0_i32 : i32
    %1 = arith.extui %0 : i1 to i32
    %c0_i32_0 = arith.constant 0 : i32
    %2 = arith.cmpi ne, %1, %c0_i32_0 : i32
    scf.if %2 {
      %cst_9 = arith.constant 0.000000e+00 : f32
      %12 = vector.broadcast %cst_9 : f32 to vector<4x4xf32>
      %c0_10 = arith.constant 0 : index
      %c0_11 = arith.constant 0 : index
      %13 = vector.load %arg4[%c0_10, %c0_11] : memref<4x4xf32, #tpu.memory_space<vmem>>, vector<4x4xf32>
      tpu.vector_store %arg4[%c0_10, %c0_11], %12 {strides = array<i32>} : memref<4x4xf32, #tpu.memory_space<vmem>>, vector<4x4xf32>,
    } else {
    }
    %c0 = arith.constant 0 : index
    %c0_1 = arith.constant 0 : index
    %c0_2 = arith.constant 0 : index
    %3 = vector.load %arg2[%c0, %c0_1, %c0_2] : memref<1x4x256xf32, #tpu.memory_space<vmem>>, vector<1x4x256xf32>
    %4 = vector.shape_cast %3 : vector<1x4x256xf32> to vector<4x256xf32>
    %c0_3 = arith.constant 0 : index
    %c0_4 = arith.constant 0 : index
    %5 = vector.load %arg4[%c0_3, %c0_4] : memref<4x4xf32, #tpu.memory_space<vmem>>, vector<4x4xf32>
    %cst = arith.constant dense<0.000000e+00> : vector<4x4xf32>
    %6 = tpu.matmul %4, %4, %cst {dimension_numbers = #tpu.dot_dimension_numbers<[1], [1], [0], [0], [0, 0, 1, 0], [], []>} : vector<4x256xf32>, vector<4x256xf32>, vector<4x4xf32> -> vector<4x4xf32>
    %7 = arith.addf %5, %6 : vector<4x4xf32>
    %c0_5 = arith.constant 0 : index
    %c0_6 = arith.constant 0 : index
    %8 = vector.load %arg4[%c0_5, %c0_6] : memref<4x4xf32, #tpu.memory_space<vmem>>, vector<4x4xf32>
    tpu.vector_store %arg4[%c0_5, %c0_6], %7 {strides = array<i32>} : memref<4x4xf32, #tpu.memory_space<vmem>>, vector<4x4xf32>,
    %c0_i32_7 = arith.constant 0 : i32
    %9 = arith.cmpi eq, %arg1, %c0_i32_7 : i32
    %10 = arith.extui %9 : i1 to i32
    %c0_i32_8 = arith.constant 0 : i32
    %11 = arith.cmpi ne, %10, %c0_i32_8 : i32
    scf.if %11 {
      %c0_9 = arith.constant 0 : index
      %c0_10 = arith.constant 0 : index
      %12 = vector.load %arg4[%c0_9, %c0_10] : memref<4x4xf32, #tpu.memory_space<vmem>>, vector<4x4xf32>
      %cst_11 = arith.constant dense<0x7F800000> : vector<4xf32>
      %13 = vector.multi_reduction <minimumf>, %12, %cst_11 [1] : vector<4x4xf32> to vector<4xf32>
      %14 = vector.shape_cast %13 : vector<4xf32> to vector<4x1xf32>
      %15 = vector.broadcast %14 : vector<4x1xf32> to vector<4x4xf32>
      %16 = arith.subf %15, %12 : vector<4x4xf32>
      %17 = math.exp %16 : vector<4x4xf32>
      %cst_12 = arith.constant dense<0.000000e+00> : vector<4xf32>
      %18 = vector.multi_reduction <add>, %17, %cst_12 [1] : vector<4x4xf32> to vector<4xf32>
      %19 = vector.shape_cast %18 : vector<4xf32> to vector<4x1xf32>
      %20 = tpu.reciprocal %19 {approx = true} : vector<4x1xf32> -> vector<4x1xf32>
      %21 = vector.broadcast %20 : vector<4x1xf32> to vector<4x4xf32>
      %22 = arith.mulf %17, %21 : vector<4x4xf32>
      %c0_13 = arith.constant 0 : index
      %c0_14 = arith.constant 0 : index
      %c0_15 = arith.constant 0 : index
      %23 = vector.load %arg3[%c0_13, %c0_14, %c0_15] : memref<1x4x4xf32, #tpu.memory_space<vmem>>, vector<1x4x4xf32>
      %24 = vector.shape_cast %23 : vector<1x4x4xf32> to vector<4x4xf32>
      %25 = vector.shape_cast %22 : vector<4x4xf32> to vector<1x4x4xf32>
      tpu.vector_store %arg3[%c0_13, %c0_14, %c0_15], %25 {strides = array<i32>} : memref<1x4x4xf32, #tpu.memory_space<vmem>>, vector<1x4x4xf32>,
    } else {
    }
    return
  }
  func.func @transform_0(%arg0: i32, %arg1: i32) -> (i32, i32, i32) {
    %c0_i32 = arith.constant 0 : i32
    %c0_i32_0 = arith.constant 0 : i32
    return %arg0, %c0_i32, %arg1 : i32, i32, i32
  }
  func.func @transform_1(%arg0: i32, %arg1: i32) -> (i32, i32, i32) {
    %c0_i32 = arith.constant 0 : i32
    %c0_i32_0 = arith.constant 0 : i32
    %c0_i32_1 = arith.constant 0 : i32
    return %arg0, %c0_i32, %c0_i32_0 : i32, i32, i32
  }
}

</mosaic_0001>

<bundles_post_ra>
// kernel: tpu_custom_call.1
= control target key start
LH: loop header
LB: loop body
LE: loop exit
PB: predicated region body
PF: predicated region fallthrough
CT: control target
= control target key end

     0   :  { %6 = vsyncpa [#allocation4], 0  ;;  %s660_s0 = inlined_call_operand.hbm [shape: f32[2,4,256], index: 0, kind: input, shape index: {}]   ;;  %s661_s1 = inlined_call_operand.hbm [shape: f32[2,4,4], index: 1, kind: output, shape index: {}]  }
   0x1   :  { %8 = vsyncpa [#allocation4 + $0x1], 0 }
   0x2   :  { %9 = vsyncpa [#allocation5], 0 }
   0x3   :  { %11 = vsyncpa [#allocation5 + $0x1], 0  ;;  %s534_s6 = smov 0   ;;  %s536_s7 = smov 0  }
   0x4   :  { %s538_s8 = smov 0   ;;  %s540_s9 = smov 0  }
   0x5   :  { %s542_s10 = smov 0   ;;  %s544_s11 = smov 0  }
   0x6 LB: > { %s327_s12 = sadd.s32 4294967295, %s521_s11   ;;  %s328_s13 = sadd.s32 4294967294, %s521_s11   ;;  %s521_s11 = sphi %s544_s11, %s17_s11   ;;  %s517_s10 = sphi %s542_s10, %s670_s10   ;;  %s513_s9 = sphi %s540_s9, %s669_s9   ;;  %s509_s8 = sphi %s538_s8, %s668_s8   ;;  %s505_s7 = sphi %s536_s7, %s667_s7   ;;  %s501_s6 = sphi %s534_s6, %s666_s6  }
   0x7   : > { %s29_s14 = sadd.s32 1, %s517_s10  ;;  %s38_s15 = sadd.s32 1, %s509_s8 }
   0x8   : > { %p31_p0 = scmp.ge.s32.totalorder %s29_s14, 2  ;;  %p45_p1 = scmp.ne.s32.totalorder %s509_s8, %s505_s7 }
   0x9   : > { %p46_p2 = scmp.eq.s32.totalorder %s521_s11, 0  ;;  %p51_p3 = scmp.ne.s32.totalorder %s505_s7, %s501_s6 }
   0xa   : > { %s672_s14 = smov (%p31_p0, %s29_s14), 0  ;;  %p52_p5 = scmp.eq.s32.totalorder %s327_s12, 0 }
   0xb   : > { %p575_p4 = por %p46_p2, %p45_p1  ;;  %s33_s17 = ssub.s32 %s517_s10, %s672_s14 }
   0xc   : > { %p75_p6 = scmp.eq.s32.totalorder %s327_s12, 1  ;;  %p36_p7 = scmp.eq.s32.totalorder %s33_s17, 0 }
   0xd   : > { %p581_p8 = por %p52_p5, %p51_p3  ;;  %p81_p10 = scmp.eq.s32.totalorder %s328_s13, 1 }
   0xe   : > { %p585_p9 = por %p75_p6, %p45_p1  ;;  %p330_p12 = scmp.ge.s32.totalorder %s521_s11, 2 }
   0xf   : > { %s590_s20 = scalar_select %p36_p7, %s509_s8, %s38_s15  }
  0x10   : > { %p592_p11 = por %p81_p10, %p51_p3  ;;  %p354_p13 = scmp.lt.s32.totalorder %s521_s11, 2 }
  0x11   : > { %s101_s22 = sand.u32 1, %s509_s8   ;;  %s341_s24 = sshll.u32 %s517_s10, 3 }
  0x12   : > { %s331_s23 = sshll.u32 %s101_s22, 3  ;;  %s112_s27 = scalar_lea.hbm %s660_s0, %s341_s24 }
  0x13   : > { %s105_s28 = scalar_lea.vmem [#allocation3], %s331_s23  ;;  %s114_s30 = sshll.u32 %s112_s27, 4  ;;  %s115_s30 = int_to_ptr.hbm [resolvable:$true] %s114_s30 }
  0x14   : > { %s116_s29 = sshll.u32 %s105_s28, 4  ;;  %p347_p0 = pnand %p354_p13, %p575_p4  ;;  %s117_s29 = int_to_ptr.vmem [resolvable:$true] %s116_s29 }
  0x15   : > { %p334_p1 = scmp.ge.s32.totalorder %s521_s11, 1  ;;  %p121_p2 = scmp.lt.s32.totalorder %s521_s11, 3 }
  0x16   : > { %s102_s2 = scalar_lea.sflag [#allocation4], %s101_s22 }
  0x17   : > { %349 = dma.hbm_to_vmem [thread:$0]  (!%p347_p0), %s115_s30, 128, %s117_s29, %s102_s2  }
  0x18   : > { %p122_p3 = pnand %p334_p1, %p121_p2 }
  0x19   : > { %s608_s3 = sand.u32 (!%p122_p3), 1, %s505_s7  }
  0x1a   : > { %125 = sbr.rel (%p122_p3) target bundleno = 447 (0x1bf), region = 24  ;;  %s335_s4 = sshll.u32 (!%p122_p3), %s608_s3, 3 }
  0x1b   : > { %s128_s5 = scalar_lea.sflag (!%p122_p3), [#allocation4], %s608_s3  ;;  %s131_s12 = scalar_lea.vmem (!%p122_p3), [#allocation3], %s335_s4 }
  0x1f   : > { %492 = dma.done.wait (%p581_p8), %s128_s5, 128  }
  0x20   : > { %494 = vsyncadd (%p581_p8), %s128_s5, 4294967168  ;;  %v158_v0 = vld [vmem:[%s131_s12] sm:$0xff]  ;;  %vm156_vm0 = vcmask 27648   ;;  %v523_v5 = vmov 0.0   ;;  %s336_s13 = sshll.u32 %s608_s3, 2  ;;  %s338_s15 = sshll.u32 %s513_s9, 2 }
  0x21   : > { %161 = vst [vmem:[#allocation1] ss:$2 sm:$0xff] %v158_v0  ;;  %s241_s18 = scalar_lea.hbm %s661_s1, %s338_s15  ;;  %s150_s22 = scalar_lea.vmem [#allocation6], %s336_s13 }
  0x22   : > { %157 = vst.msk [vmem:[#allocation2] sm:$0xf] %vm156_vm0, %v523_v5  ;;  %s243_s23 = sshll.u32 %s150_s22, 4  ;;  %s245_s24 = sshll.u32 %s241_s18, 4  ;;  %s244_s23 = int_to_ptr.vmem [resolvable:$true] %s243_s23  ;;  %s246_s24 = int_to_ptr.hbm [resolvable:$true] %s245_s24 }
  0x23   : > { %s231_s25 = scalar_lea.sflag [#allocation5], %s608_s3  ;;  %s453_s26 = sshra.s32 %s246_s24, 4  ;;  %s454_s26 = int_to_ptr.hbm [resolvable:$true] %s453_s26 }
  0x24   : > { %s455_s9 = scalar_lea.hbm %s454_s26, 4  ;;  %s459_s29 = scalar_lea.hbm %s661_s1, 8 }
  0x25   : > { %p456_p4 = scmp.ne.s32.totalorder %s454_s26, %s455_s9  ;;  %p460_p7 = scmp.lt.s32.totalorder %s454_s26, %s661_s1 }
  0x26   : > { %p461_p8 = scmp.lt.s32.totalorder %s459_s29, %s455_s9 }
  0x27   : > { %p457_p5 = pnand %p456_p4, %p585_p9 }
  0x28   : > { %v162_v1 = vld.sshfl [vmem:[#allocation1] sm:$0xff pattern:$0x75316420]  ;;  %v163_v2 = vld.sshfl [vmem:[#allocation1 + $0x8] sm:$0xff pattern:$0x75316420]  ;;  %p462_p10 = por %p461_p8, %p460_p7 }
  0x29   : > { %166 = vst [vmem:[#allocation1] ss:$2 sm:$0xff] %v158_v0  ;;  %v159_v7 = vld [vmem:[#allocation2] sm:$0xf]  ;;  %p458_p6 = pneg %p457_p5 }
  0x2b   : > { %p463_p13 = pnand %p462_p10, %p458_p6 }
  0x30   : > { %v167_v3 = vld.sshfl [vmem:[#allocation1] sm:$0xff pattern:$0x75316420]  ;;  %v168_v4 = vld.sshfl [vmem:[#allocation1 + $0x8] sm:$0xff pattern:$0x75316420] }
  0x31   : > { %186 = vmatpush.xpose.msra.mxu0 %v167_v3  ;;  %206 = vmatpush.xpose.msra.mxu1 %v168_v4 }
  0x34   : > { %187 = vmatmul.f32.vlgmr.msra.gmra.mxu0 %v162_v1  ;;  %207 = vmatmul.f32.vlgmr.msra.gmra.mxu1 %v163_v2 }
  0xb1   : > { %v188_v6 = vpop.f32.mrf.mxu0  ;;  %v208_v8 = vpop.f32.mrf.mxu1 }
  0xb2   : > { %v209_v9 = vadd.f32 %v208_v8, %v188_v6 }
  0xb4   : > { %v211_v10 = vadd.f32 %v209_v9, %v159_v7 }
  0xb6   : > { %213 = vst.msk [vmem:[#allocation2] sm:$0xf] %vm156_vm0, %v211_v10 }
  0xbd   : > { %v217_v11 = vld [vmem:[#allocation2] sm:$0xf] }
  0xbe   : > { %v218_v12 = vsel %vm156_vm0, %v217_v11, inf }
  0xbf   : > { %219 = vmin.xlane.f32.xlu0 %v218_v12 }
 0x132   : > { %v220_v13 = vpop.xlane.xlu0 %219 }
 0x133   : > { %v221_v14 = vsub.f32 %v220_v13, %v217_v11 }
 0x135   : > { %v222_v15 = vmul.f32 1.442695, %v221_v14 }
 0x137   : > { %405 = vpow2.f32 %v222_v15 }
 0x13d   : > { %v406_v16 = vpop.eup %405 }
 0x13e   : > { %v224_v17 = vsel %vm156_vm0, %v406_v16, 0.0 }
 0x13f   : > { %225 = vadd.xlane.f32.xlu0 %v224_v17 }
 0x1b2   : > { %v226_v18 = vpop.xlane.xlu0 %225 }
 0x1b3   : > { %407 = vrcp.f32 %v226_v18 }
 0x1b9   : > { %v408_v19 = vpop.eup %407 }
 0x1ba   : > { %v228_v20 = vmul.f32 %v408_v19, %v406_v16 }
 0x1bc   : > { %229 = vst.msk [vmem:[%s150_s22] sm:$0xf] %vm156_vm0, %v228_v20 }
 0x1bd   : > { %466 = shalt.err (!%p463_p13)
}
 0x1be   : > { %344 = dma.vmem_to_hbm [thread:$0]  (%p585_p9), %s244_s23, 64, %s246_s24, %s231_s25  }
 0x1bf PF: > { %s257_s3 = sand.u32 1, %s501_s6   ;;  %p351_p0 = pnand %p330_p12, %p592_p11 }
 0x1c0   : > { %s258_s4 = scalar_lea.sflag [#allocation5], %s257_s3 }
 0x1c1   : > { %p352_p1 = pneg %p351_p0 }
 0x1c3   : > { %496 = dma.done.wait (%p352_p1), %s258_s4, 64  }
 0x1c4   : > { %498 = vsyncadd (%p352_p1), %s258_s4, 4294967232  ;;  %s17_s11 = sadd.s32 1, %s521_s11   ;;  %s666_s6 = smov %s505_s7 }
 0x1c5   : > { %p14_p2 = scmp.ge.s32.totalorder %s17_s11, 4   ;;  %s667_s7 = smov %s509_s8 }
 0x1c6   : > { %s668_s8 = smov %s590_s20  ;;  %s669_s9 = smov %s517_s10 }
 0x1c7   : > { %s670_s10 = smov %s672_s14  ;;  %16 = sbr.rel (!%p14_p2) target bundleno = 6 (0x6), region = 77 }
 0x1cc   :  { %264 = vsyncpa [#allocation4], 1 }
 0x1cd   :  { %266 = vsyncpa [#allocation4 + $0x1], 1 }
 0x1ce   :  { %267 = vsyncpa [#allocation5], 1 }
 0x1cf   :  { %269 = vsyncpa [#allocation5 + $0x1], 1 }

</bundles_post_ra>
